<compile_context>
chip_gen: v7x
topology: tpu7x:2x2x1
jax: 0.10.0
libtpu: 0.0.40
codegen_flags: <defaults>
</compile_context>

<pallas_src>
import functools

import jax
import jax.numpy as jnp
from jax import lax
from jax.experimental import pallas as pl
from jax.experimental.pallas import tpu as pltpu


def _round_up(n, m):
    return ((n + m - 1) // m) * m


def _self_attention_kernel(x_ref, wkv_ref, wq_ref, wo_ref, y_ref, att_ref, *,
                           heads, dh_pad, tq, t_real, mxu_dtype):
    """One query-row tile of the forward pass.

    x_ref   : [T_kv, D]            padded input sequence (VMEM-resident)
    wkv_ref : [D, 2*H*Dh_pad]      packed K|V weights, per-head 128-lane blocks
    wq_ref  : [D, H*Dh_pad]        packed Q weights
    wo_ref  : [H*Dh_pad, D]        output projection, zero rows at Dh padding
    y_ref   : [tq, D]              output tile
    att_ref : [tq, T_kv]           last head's attention tile (lane-dense)
    """
    t_kv = x_ref.shape[0]
    hdp = heads * dh_pad

    x_kv = x_ref[...].astype(mxu_dtype)                      # [T_kv, D]
    row0 = pl.multiple_of(pl.program_id(0) * tq, tq)
    x_q = x_ref[pl.ds(row0, tq), :].astype(mxu_dtype)        # [tq, D]

    # Packed, lane-aligned projections (one fat matmul each, f32 accumulation).
    kv = jnp.dot(x_kv, wkv_ref[...], preferred_element_type=jnp.float32)   # [T_kv, 2*H*Dh_pad]
    q = jnp.dot(x_q, wq_ref[...], preferred_element_type=jnp.float32)      # [tq,   H*Dh_pad]

    # Mask for zero-padded key rows (rows >= t_real of x are padding).
    key_valid = lax.broadcasted_iota(jnp.int32, (tq, t_kv), 1) < t_real

    head_outs = []
    att = None
    for h in range(heads):                          # static -> unrolled at trace time
        lo = h * dh_pad                             # multiple of 128 -> aligned slices
        K = kv[:, lo:lo + dh_pad]                   # [T_kv, Dh_pad]
        V = kv[:, hdp + lo:hdp + lo + dh_pad]       # [T_kv, Dh_pad]
        Q = q[:, lo:lo + dh_pad]                    # [tq,   Dh_pad]

        # energies = Q @ K^T : contract Dh_pad with Dh_pad (no explicit transpose).
        energies = lax.dot_general(
            Q.astype(mxu_dtype), K.astype(mxu_dtype),
            (((1,), (1,)), ((), ())),
            preferred_element_type=jnp.float32)                             # [tq, T_kv]
        energies = jnp.where(key_valid, energies, jnp.float32(-1e30))

        # Numerically-stabilized softmax; all VPU/EUP math in f32; EXACT divide
        # (att is a user-facing PGL-SUM output, rows must sum to 1).
        m = jnp.max(energies, axis=-1, keepdims=True)
        p = jnp.exp(energies - m)
        att = p * (1.0 / jnp.sum(p, axis=-1, keepdims=True))

        # Dropout(p=0.5) is identity in eval mode.
        head_outs.append(jnp.dot(att.astype(mxu_dtype), V.astype(mxu_dtype),
                                 preferred_element_type=jnp.float32))       # [tq, Dh_pad]

    # One fat output projection (K = H*Dh_pad >= 128) instead of H small K=64 matmuls.
    cat = jnp.concatenate(head_outs, axis=1).astype(mxu_dtype)              # [tq, H*Dh_pad]
    y = jnp.dot(cat, wo_ref[...], preferred_element_type=jnp.float32)       # [tq, D]

    y_ref[...] = y.astype(y_ref.dtype)
    # Last head's attention: single lane-dense full-block store (padded cols are 0).
    att_ref[...] = att.astype(att_ref.dtype)


def pack_weights(wk, wq, wv, wo, mxu_dtype=jnp.bfloat16):
    """Pack/pad projection weights ONCE (outside the per-call path).

    wk/wq/wv: [H, D, Dh] (pre-transposed so K = x @ wk[h]); wo: [H*Dh, D].
    Each head's Dh block is zero-padded to a multiple of 128 lanes so per-head
    slices inside the kernel are lane-tile aligned; padding is mathematically inert.
    """
    H, D, Dh = wk.shape
    dh_pad = _round_up(Dh, 128)

    def flat(w):                                    # [H, D, Dh] -> [D, H*dh_pad]
        w = jnp.pad(w, ((0, 0), (0, 0), (0, dh_pad - Dh)))
        return jnp.transpose(w, (1, 0, 2)).reshape(D, H * dh_pad)

    w_kv = jnp.concatenate([flat(wk), flat(wv)], axis=1)        # [D, 2*H*dh_pad]
    w_q = flat(wq)                                              # [D, H*dh_pad]
    wo_pad = jnp.pad(wo.reshape(H, Dh, D),
                     ((0, 0), (0, dh_pad - Dh), (0, 0))).reshape(H * dh_pad, D)
    return (w_q.astype(mxu_dtype), w_kv.astype(mxu_dtype), wo_pad.astype(mxu_dtype))


def self_attention_pallas(x, packed_weights, *, heads, tq=64, mxu_dtype=jnp.bfloat16):
    """x: [T, D]; packed_weights from pack_weights(). Returns (y [T, D], att [T, T])."""
    w_q, w_kv, w_o = packed_weights
    T, D = x.shape
    dh_pad = w_q.shape[1] // heads
    hdp = heads * dh_pad
    assert w_kv.shape == (D, 2 * hdp) and w_o.shape == (hdp, D)

    tq = max(8, min(128, _round_up(tq, 8)))
    assert 128 % tq == 0, "tq must divide 128"
    t_kv = _round_up(T, 128)              # key axis padded -> lane-dense att block
    n_q = pl.cdiv(T, tq)                  # query-row tiles actually computed
    t_q = n_q * tq

    x_pad = jnp.pad(x, ((0, t_kv - T), (0, 0)))

    # --- advisory cost / VMEM sizing ----------------------------------------
    w_bytes = (w_q.size * w_q.dtype.itemsize + w_kv.size * w_kv.dtype.itemsize
               + w_o.size * w_o.dtype.itemsize)
    flops = n_q * (2 * t_kv * D * (2 * hdp)            # K/V projection (per tile)
                   + 2 * tq * D * hdp                  # Q projection
                   + heads * 4 * tq * t_kv * dh_pad    # Q@K^T + A@V
                   + 2 * tq * hdp * D)                 # output projection
    transcendentals = n_q * heads * tq * t_kv
    bytes_accessed = x_pad.size * 4 + w_bytes + t_q * D * 4 + t_q * t_kv * 4

    resident = x_pad.size * 4 + w_bytes                       # VMEM-resident inputs
    out_tiles = 2 * (tq * D * 4 + tq * t_kv * 4)              # double-buffered outputs
    temps = (t_kv * 2 * hdp * 4 + tq * hdp * 4                # kv, q (f32)
             + 4 * tq * t_kv * 4                              # energies/p/att/mask
             + 2 * tq * hdp * 4)                              # head outputs + cat
    vmem_limit = min(int(2 * (resident + out_tiles + temps)) + (4 << 20), 100 << 20)

    kernel = functools.partial(_self_attention_kernel, heads=heads, dh_pad=dh_pad,
                               tq=tq, t_real=T, mxu_dtype=mxu_dtype)

    y_pad, att_pad = pl.pallas_call(
        kernel,
        grid=(n_q,),
        in_specs=[
            pl.BlockSpec((t_kv, D), lambda i: (0, 0)),        # x (VMEM-resident)
            pl.BlockSpec(w_kv.shape, lambda i: (0, 0)),       # packed K|V weights
            pl.BlockSpec(w_q.shape, lambda i: (0, 0)),        # packed Q weights
            pl.BlockSpec(w_o.shape, lambda i: (0, 0)),        # padded out-projection
        ],
        out_specs=(
            pl.BlockSpec((tq, D), lambda i: (i, 0)),          # y tile
            pl.BlockSpec((tq, t_kv), lambda i: (i, 0)),       # last-head attention tile
        ),
        out_shape=(
            jax.ShapeDtypeStruct((t_q, D), jnp.float32),
            jax.ShapeDtypeStruct((t_q, t_kv), jnp.float32),
        ),
        compiler_params=pltpu.CompilerParams(
            dimension_semantics=("parallel",),                # megacore-shardable (v7x)
            vmem_limit_bytes=vmem_limit),
        cost_estimate=pl.CostEstimate(flops=flops, transcendentals=transcendentals,
                                      bytes_accessed=bytes_accessed),
    )(x_pad, w_kv, w_q, w_o)

    return y_pad[:T], att_pad[:T, :T]


def self_attention_reference(x, wk, wq, wv, wo, mxu_dtype=jnp.float32):
    """Pure-JAX reference mirroring the PyTorch forward (pos_enc=None, eval).

    With mxu_dtype=bfloat16 it applies the same MXU-operand casts as the kernel
    (f32 accumulation, f32 softmax) so the kernel can be checked tightly.
    """
    heads = wk.shape[0]
    c = lambda a: a.astype(mxu_dtype)
    outs = []
    att = None
    for h in range(heads):
        K = jnp.dot(c(x), c(wk[h]), preferred_element_type=jnp.float32)
        Q = jnp.dot(c(x), c(wq[h]), preferred_element_type=jnp.float32)
        V = jnp.dot(c(x), c(wv[h]), preferred_element_type=jnp.float32)
        e = jnp.dot(c(Q), c(K).T, preferred_element_type=jnp.float32)
        e = e - jnp.max(e, axis=-1, keepdims=True)
        p = jnp.exp(e)
        att = p / jnp.sum(p, axis=-1, keepdims=True)
        outs.append(jnp.dot(c(att), c(V), preferred_element_type=jnp.float32))
    cat = jnp.concatenate(outs, axis=1)
    y = jnp.dot(c(cat), c(wo), preferred_element_type=jnp.float32)
    return y, att


if __name__ == "__main__":
    # Small shapes consistent with the module: T frames, feature dim D = input_size.
    T = 16            # sequence length
    D = 128           # input_size (== output dim of the out projection)
    OUT = 128         # output_size
    HEADS = 2
    DH = OUT // HEADS

    key = jax.random.PRNGKey(0)
    kx, kk, kq, kv_, ko = jax.random.split(key, 5)
    x = jax.random.normal(kx, (T, D), dtype=jnp.float32)

    # nn.Linear(in, out, bias=False) has weight [out, in] and computes x @ W.T;
    # we store the transposed weights directly so the math is x @ w.
    s = 1.0 / float(D) ** 0.5
    wk = jax.random.uniform(kk, (HEADS, D, DH), jnp.float32, -s, s)
    wq = jax.random.uniform(kq, (HEADS, D, DH), jnp.float32, -s, s)
    wv = jax.random.uniform(kv_, (HEADS, D, DH), jnp.float32, -s, s)
    so = 1.0 / float(OUT) ** 0.5
    wo = jax.random.uniform(ko, (OUT, D), jnp.float32, -so, so)

    # Pack/pad weights ONCE (outside the per-call path).
    packed = pack_weights(wk, wq, wv, wo, mxu_dtype=jnp.bfloat16)

    # tq=8 gives a 2-step "parallel" grid even at this toy T.
    y, att = self_attention_pallas(x, packed, heads=HEADS, tq=8, mxu_dtype=jnp.bfloat16)
    jax.block_until_ready((y, att))
    assert y.shape == (T, D) and att.shape == (T, T)

    # Tight check vs. a JAX reference that uses the same bf16 MXU-operand casts.
    y_q, att_q = self_attention_reference(x, wk, wq, wv, wo, mxu_dtype=jnp.bfloat16)
    assert jnp.allclose(att.sum(axis=-1), 1.0, atol=1e-3), "att rows must sum to 1"
    assert jnp.allclose(y, y_q, atol=2e-3, rtol=2e-3), "y mismatch vs bf16 reference"
    assert jnp.allclose(att, att_q, atol=2e-3, rtol=2e-3), "att mismatch vs bf16 reference"

    # Loose sanity check vs. full-f32 module math (difference == intended bf16
    # MXU-operand quantization, not a structural bug).
    y_f, att_f = self_attention_reference(x, wk, wq, wv, wo, mxu_dtype=jnp.float32)
    assert jnp.allclose(y, y_f, atol=6e-2, rtol=6e-2), "y deviates too far from f32 math"
    assert jnp.allclose(att, att_f, atol=6e-2, rtol=6e-2), "att deviates too far from f32 math"

    print("KERNEL_OK")
</pallas_src>

<mosaic_0001>
module attributes {stable_mosaic.version = 11 : i64} {
  func.func @_self_attention_kernel(%arg0: i32, %arg1: memref<128x128xf32, #tpu.memory_space<vmem>>, %arg2: memref<128x512xbf16, #tpu.memory_space<vmem>>, %arg3: memref<128x256xbf16, #tpu.memory_space<vmem>>, %arg4: memref<256x128xbf16, #tpu.memory_space<vmem>>, %arg5: memref<8x128xf32, #tpu.memory_space<vmem>>, %arg6: memref<8x128xf32, #tpu.memory_space<vmem>>) attributes {dimension_semantics = [#tpu.dimension_semantics<parallel>], iteration_bounds = array<i64: 2>, scalar_prefetch = 0 : i64, scratch_operands = 0 : i64, tpu.core_type = #tpu.core_type<tc>, window_params = [{pipeline_mode = #tpu.pipeline_mode<synchronous>, transform_indices = @transform_0, window_bounds = array<i64: 128, 128>}, {pipeline_mode = #tpu.pipeline_mode<synchronous>, transform_indices = @transform_1, window_bounds = array<i64: 128, 512>}, {pipeline_mode = #tpu.pipeline_mode<synchronous>, transform_indices = @transform_2, window_bounds = array<i64: 128, 256>}, {pipeline_mode = #tpu.pipeline_mode<synchronous>, transform_indices = @transform_3, window_bounds = array<i64: 256, 128>}, {transform_indices = @transform_4, window_bounds = array<i64: 8, 128>}, {transform_indices = @transform_5, window_bounds = array<i64: 8, 128>}]} {
    %c0 = arith.constant 0 : index
    %c0_0 = arith.constant 0 : index
    %0 = vector.load %arg1[%c0, %c0_0] : memref<128x128xf32, #tpu.memory_space<vmem>>, vector<128x128xf32>
    %1 = arith.truncf %0 : vector<128x128xf32> to vector<128x128xbf16>
    %c8_i32 = arith.constant 8 : i32
    %2 = arith.muli %arg0, %c8_i32 : i32
    %3 = tpu.assume_multiple %2, 8 : i32
    %4 = arith.index_cast %3 : i32 to index
    %c0_1 = arith.constant 0 : index
    %5 = vector.load %arg1[%4, %c0_1] : memref<128x128xf32, #tpu.memory_space<vmem>>, vector<8x128xf32>
    %6 = arith.truncf %5 : vector<8x128xf32> to vector<8x128xbf16>
    %c0_2 = arith.constant 0 : index
    %c0_3 = arith.constant 0 : index
    %7 = vector.load %arg2[%c0_2, %c0_3] : memref<128x512xbf16, #tpu.memory_space<vmem>>, vector<128x512xbf16>
    %cst = arith.constant dense<0.000000e+00> : vector<128x512xf32>
    %8 = tpu.matmul %1, %7, %cst {dimension_numbers = #tpu.dot_dimension_numbers<[1], [0], [0], [1], [0, 0, 1, 1], [], []>} : vector<128x128xbf16>, vector<128x512xbf16>, vector<128x512xf32> -> vector<128x512xf32>
    %c0_4 = arith.constant 0 : index
    %c0_5 = arith.constant 0 : index
    %9 = vector.load %arg3[%c0_4, %c0_5] : memref<128x256xbf16, #tpu.memory_space<vmem>>, vector<128x256xbf16>
    %cst_6 = arith.constant dense<0.000000e+00> : vector<8x256xf32>
    %10 = tpu.matmul %6, %9, %cst_6 {dimension_numbers = #tpu.dot_dimension_numbers<[1], [0], [0], [1], [0, 0, 1, 1], [], []>} : vector<8x128xbf16>, vector<128x256xbf16>, vector<8x256xf32> -> vector<8x256xf32>
    %11 = tpu.iota {dimensions = array<i32: 1>} : vector<8x128xi32>
    %c16_i32 = arith.constant 16 : i32
    %12 = vector.broadcast %c16_i32 : i32 to vector<8x128xi32>
    %13 = arith.cmpi slt, %11, %12 : vector<8x128xi32>
    %14 = vector.extract_strided_slice %8 {offsets = [0, 0], sizes = [128, 128], strides = [1, 1]} : vector<128x512xf32> to vector<128x128xf32>
    %15 = vector.extract_strided_slice %8 {offsets = [0, 256], sizes = [128, 128], strides = [1, 1]} : vector<128x512xf32> to vector<128x128xf32>
    %16 = vector.extract_strided_slice %10 {offsets = [0, 0], sizes = [8, 128], strides = [1, 1]} : vector<8x256xf32> to vector<8x128xf32>
    %17 = arith.truncf %16 : vector<8x128xf32> to vector<8x128xbf16>
    %18 = arith.truncf %14 : vector<128x128xf32> to vector<128x128xbf16>
    %cst_7 = arith.constant dense<0.000000e+00> : vector<8x128xf32>
    %19 = tpu.matmul %17, %18, %cst_7 {dimension_numbers = #tpu.dot_dimension_numbers<[1], [1], [0], [0], [0, 0, 1, 0], [], []>} : vector<8x128xbf16>, vector<128x128xbf16>, vector<8x128xf32> -> vector<8x128xf32>
    %cst_8 = arith.constant -1.000000e+30 : f32
    %20 = vector.broadcast %cst_8 : f32 to vector<8x128xf32>
    %21 = arith.select %13, %19, %20 : vector<8x128xi1>, vector<8x128xf32>
    %cst_9 = arith.constant dense<0xFF800000> : vector<8xf32>
    %22 = vector.multi_reduction <maximumf>, %21, %cst_9 [1] : vector<8x128xf32> to vector<8xf32>
    %23 = vector.shape_cast %22 : vector<8xf32> to vector<8x1xf32>
    %24 = vector.broadcast %23 : vector<8x1xf32> to vector<8x128xf32>
    %25 = arith.subf %21, %24 : vector<8x128xf32>
    %26 = math.exp %25 : vector<8x128xf32>
    %cst_10 = arith.constant dense<0.000000e+00> : vector<8xf32>
    %27 = vector.multi_reduction <add>, %26, %cst_10 [1] : vector<8x128xf32> to vector<8xf32>
    %28 = vector.shape_cast %27 : vector<8xf32> to vector<8x1xf32>
    %cst_11 = arith.constant 1.000000e+00 : f32
    %29 = vector.broadcast %cst_11 : f32 to vector<8x1xf32>
    %30 = arith.divf %29, %28 : vector<8x1xf32>
    %31 = vector.broadcast %30 : vector<8x1xf32> to vector<8x128xf32>
    %32 = arith.mulf %26, %31 : vector<8x128xf32>
    %33 = arith.truncf %32 : vector<8x128xf32> to vector<8x128xbf16>
    %34 = arith.truncf %15 : vector<128x128xf32> to vector<128x128xbf16>
    %cst_12 = arith.constant dense<0.000000e+00> : vector<8x128xf32>
    %35 = tpu.matmul %33, %34, %cst_12 {dimension_numbers = #tpu.dot_dimension_numbers<[1], [0], [0], [1], [0, 0, 1, 1], [], []>} : vector<8x128xbf16>, vector<128x128xbf16>, vector<8x128xf32> -> vector<8x128xf32>
    %36 = vector.extract_strided_slice %8 {offsets = [0, 128], sizes = [128, 128], strides = [1, 1]} : vector<128x512xf32> to vector<128x128xf32>
    %37 = vector.extract_strided_slice %8 {offsets = [0, 384], sizes = [128, 128], strides = [1, 1]} : vector<128x512xf32> to vector<128x128xf32>
    %38 = vector.extract_strided_slice %10 {offsets = [0, 128], sizes = [8, 128], strides = [1, 1]} : vector<8x256xf32> to vector<8x128xf32>
    %39 = arith.truncf %38 : vector<8x128xf32> to vector<8x128xbf16>
    %40 = arith.truncf %36 : vector<128x128xf32> to vector<128x128xbf16>
    %cst_13 = arith.constant dense<0.000000e+00> : vector<8x128xf32>
    %41 = tpu.matmul %39, %40, %cst_13 {dimension_numbers = #tpu.dot_dimension_numbers<[1], [1], [0], [0], [0, 0, 1, 0], [], []>} : vector<8x128xbf16>, vector<128x128xbf16>, vector<8x128xf32> -> vector<8x128xf32>
    %cst_14 = arith.constant -1.000000e+30 : f32
    %42 = vector.broadcast %cst_14 : f32 to vector<8x128xf32>
    %43 = arith.select %13, %41, %42 : vector<8x128xi1>, vector<8x128xf32>
    %cst_15 = arith.constant dense<0xFF800000> : vector<8xf32>
    %44 = vector.multi_reduction <maximumf>, %43, %cst_15 [1] : vector<8x128xf32> to vector<8xf32>
    %45 = vector.shape_cast %44 : vector<8xf32> to vector<8x1xf32>
    %46 = vector.broadcast %45 : vector<8x1xf32> to vector<8x128xf32>
    %47 = arith.subf %43, %46 : vector<8x128xf32>
    %48 = math.exp %47 : vector<8x128xf32>
    %cst_16 = arith.constant dense<0.000000e+00> : vector<8xf32>
    %49 = vector.multi_reduction <add>, %48, %cst_16 [1] : vector<8x128xf32> to vector<8xf32>
    %50 = vector.shape_cast %49 : vector<8xf32> to vector<8x1xf32>
    %cst_17 = arith.constant 1.000000e+00 : f32
    %51 = vector.broadcast %cst_17 : f32 to vector<8x1xf32>
    %52 = arith.divf %51, %50 : vector<8x1xf32>
    %53 = vector.broadcast %52 : vector<8x1xf32> to vector<8x128xf32>
    %54 = arith.mulf %48, %53 : vector<8x128xf32>
    %55 = arith.truncf %54 : vector<8x128xf32> to vector<8x128xbf16>
    %56 = arith.truncf %37 : vector<128x128xf32> to vector<128x128xbf16>
    %cst_18 = arith.constant dense<0.000000e+00> : vector<8x128xf32>
    %57 = tpu.matmul %55, %56, %cst_18 {dimension_numbers = #tpu.dot_dimension_numbers<[1], [0], [0], [1], [0, 0, 1, 1], [], []>} : vector<8x128xbf16>, vector<128x128xbf16>, vector<8x128xf32> -> vector<8x128xf32>
    %58 = tpu.concatenate %35, %57 in 1 : vector<8x128xf32>, vector<8x128xf32> -> vector<8x256xf32>
    %59 = arith.truncf %58 : vector<8x256xf32> to vector<8x256xbf16>
    %c0_19 = arith.constant 0 : index
    %c0_20 = arith.constant 0 : index
    %60 = vector.load %arg4[%c0_19, %c0_20] : memref<256x128xbf16, #tpu.memory_space<vmem>>, vector<256x128xbf16>
    %cst_21 = arith.constant dense<0.000000e+00> : vector<8x128xf32>
    %61 = tpu.matmul %59, %60, %cst_21 {dimension_numbers = #tpu.dot_dimension_numbers<[1], [0], [0], [1], [0, 0, 1, 1], [], []>} : vector<8x256xbf16>, vector<256x128xbf16>, vector<8x128xf32> -> vector<8x128xf32>
    %c0_22 = arith.constant 0 : index
    %c0_23 = arith.constant 0 : index
    %62 = vector.load %arg5[%c0_22, %c0_23] : memref<8x128xf32, #tpu.memory_space<vmem>>, vector<8x128xf32>
    tpu.vector_store %arg5[%c0_22, %c0_23], %61 {strides = array<i32>} : memref<8x128xf32, #tpu.memory_space<vmem>>, vector<8x128xf32>,
    %c0_24 = arith.constant 0 : index
    %c0_25 = arith.constant 0 : index
    %63 = vector.load %arg6[%c0_24, %c0_25] : memref<8x128xf32, #tpu.memory_space<vmem>>, vector<8x128xf32>
    tpu.vector_store %arg6[%c0_24, %c0_25], %54 {strides = array<i32>} : memref<8x128xf32, #tpu.memory_space<vmem>>, vector<8x128xf32>,
    return
  }
  func.func @transform_0(%arg0: i32) -> (i32, i32) {
    %c0_i32 = arith.constant 0 : i32
    %c0_i32_0 = arith.constant 0 : i32
    %c0_i32_1 = arith.constant 0 : i32
    return %c0_i32, %c0_i32_0 : i32, i32
  }
  func.func @transform_1(%arg0: i32) -> (i32, i32) {
    %c0_i32 = arith.constant 0 : i32
    %c0_i32_0 = arith.constant 0 : i32
    %c0_i32_1 = arith.constant 0 : i32
    return %c0_i32, %c0_i32_0 : i32, i32
  }
  func.func @transform_2(%arg0: i32) -> (i32, i32) {
    %c0_i32 = arith.constant 0 : i32
    %c0_i32_0 = arith.constant 0 : i32
    %c0_i32_1 = arith.constant 0 : i32
    return %c0_i32, %c0_i32_0 : i32, i32
  }
  func.func @transform_3(%arg0: i32) -> (i32, i32) {
    %c0_i32 = arith.constant 0 : i32
    %c0_i32_0 = arith.constant 0 : i32
    %c0_i32_1 = arith.constant 0 : i32
    return %c0_i32, %c0_i32_0 : i32, i32
  }
  func.func @transform_4(%arg0: i32) -> (i32, i32) {
    %c0_i32 = arith.constant 0 : i32
    %c0_i32_0 = arith.constant 0 : i32
    return %arg0, %c0_i32 : i32, i32
  }
  func.func @transform_5(%arg0: i32) -> (i32, i32) {
    %c0_i32 = arith.constant 0 : i32
    %c0_i32_0 = arith.constant 0 : i32
    return %arg0, %c0_i32 : i32, i32
  }
}

</mosaic_0001>

<bundles_post_ra>
// kernel: tpu_custom_call.1
= control target key start
LH: loop header
LB: loop body
LE: loop exit
PB: predicated region body
PF: predicated region fallthrough
CT: control target
= control target key end

     0   :  { %s2532_s0 = inlined_call_operand.hbm [shape: f32[128,128], index: 0, kind: input, shape index: {}]   ;;  %s2533_s1 = inlined_call_operand.hbm [shape: bf16[128,512], index: 1, kind: input, shape index: {}]   ;;  %s2534_s2 = inlined_call_operand.hbm [shape: bf16[128,256], index: 2, kind: input, shape index: {}]   ;;  %s2535_s3 = inlined_call_operand.hbm [shape: bf16[256,128], index: 3, kind: input, shape index: {}]   ;;  %s2536_s4 = inlined_call_operand.hbm [shape: f32[16,128], index: 4, kind: output, shape index: {0}]   ;;  %s2537_s5 = inlined_call_operand.hbm [shape: f32[16,128], index: 5, kind: output, shape index: {1}]  }
   0x1   :  { %2541 = sst [smem:[#allocation18_spill]] %s2533_s1 }
   0x2   :  { %11 = vsyncpa [#allocation3], 0 }
   0x3   :  { %12 = vsyncpa [#allocation6], 0 }
   0x4   :  { %13 = vsyncpa [#allocation9], 0 }
   0x5   :  { %14 = vsyncpa [#allocation4], 0 }
   0x6   :  { %16 = vsyncpa [#allocation4 + $0x1], 0 }
   0x7   :  { %17 = vsyncpa [#allocation12], 0 }
   0x8   :  { %19 = vsyncpa [#allocation12 + $0x1], 0  ;;  %s2081_s18 = smov 0   ;;  %s2083_s19 = smov 0  }
   0x9   :  { %s2085_s20 = smov 0   ;;  %s2087_s21 = smov 0  }
   0xa LB: > { %s2102_s22 = sadd.s32 4294967295, %s2034_s21   ;;  %s1404_s23 = sadd.s32 4294967294, %s2034_s21   ;;  %s2034_s21 = sphi %s2087_s21, %s2560_s21   ;;  %s2030_s20 = sphi %s2085_s20, %s2559_s20   ;;  %s2026_s19 = sphi %s2083_s19, %s2558_s19   ;;  %s2022_s18 = sphi %s2081_s18, %s2557_s18  }
   0xb   : > { %s2106_s24 = sadd.s32 1, %s2034_s21   ;;  %s116_s25 = sadd.s32 1, %s2030_s20 }
   0xc   : > { %s113_s26 = ssub.s32 %s2034_s21, %s2106_s24  ;;  %p126_p0 = scmp.ne.s32.totalorder %s2030_s20, %s2026_s19 }
   0xd   : > { %p114_p1 = scmp.eq.s32.totalorder %s113_s26, 0  ;;  %p127_p2 = scmp.eq.s32.totalorder %s2102_s22, 1 }
   0xe   : > { %p132_p3 = scmp.ne.s32.totalorder %s2026_s19, %s2022_s18  ;;  %p133_p4 = scmp.eq.s32.totalorder %s1404_s23, 1 }
   0xf   : > { %s2117_s27 = scalar_select %p114_p1, %s2030_s20, %s116_s25  }
  0x10   : > { %p2119_p5 = por %p127_p2, %p126_p0  ;;  %p2123_p6 = por %p133_p4, %p132_p3 }
  0x11   : > { %p1405_p7 = scmp.ge.s32.totalorder %s2034_s21, 1  ;;  %p166_p8 = scmp.lt.s32.totalorder %s2034_s21, 3 }
  0x12   : > { %s2542_s28 = scalar_select %p2119_p5, 1, 0 }
  0x13   : > { %s2543_s29 = scalar_select %p2123_p6, 1, 0 }
  0x14   : > { %p2538_p9 = scmp.eq.s32.totalorder %s2102_s22, 0  ;;  %p2130_p10 = pnand %p1405_p7, %p166_p8 }
  0x15   : > { %s2036_s6 = smov [#allocation5]   ;;  %s2037_s9 = smov [#allocation2]  }
  0x16   : > { %s2544_s30 = scalar_select %p2130_p10, 1, 0 }
  0x17   : > { %s191_s7 = sshll.u32 %s2036_s6, 4  ;;  %p1646_p11 = pneg %p2130_p10  ;;  %s192_s7 = int_to_ptr.vmem [resolvable:$true] %s191_s7 }
  0x18   : > { %s178_s10 = sshll.u32 %s2037_s9, 4  ;;  %s2546_s1 = sld [smem:[#allocation18_spill]]  ;;  %s2142_s10 = int_to_ptr.vmem [resolvable:$true] %s178_s10 }
  0x19   : > { %p2138_p12 = pnand %p2538_p9, %p1646_p11 }
  0x1b   : > { %p2152_p0 = pneg %p2138_p12 }
  0x1e   : > { %s1816_s13 = scalar_lea.hbm %s2546_s1, 4096 }
  0x1f   : > { %p1817_p13 = scmp.ne.s32.totalorder %s2546_s1, %s1816_s13  ;;  %p1823_p3 = scmp.lt.u32.totalorder %s1816_s13, %s2546_s1 }
  0x21   : > { %p1819_p1 = pnand %p2152_p0, %p1817_p13 }
  0x23   : > { %p1820_p2 = pneg %p1819_p1 }
  0x25   : > { %p1825_p4 = pnand %p1823_p3, %p1820_p2 }
  0x27   : > { %1828 = shalt.err (!%p1825_p4)
}
  0x28   : > { %s1829_s25 = scalar_lea.vmem %s192_s7, 4096  ;;  %p1837_p9 = scmp.lt.s32.totalorder %s192_s7, %s192_s7 }
  0x29   : > { %p1830_p7 = scmp.ne.s32.totalorder %s192_s7, %s1829_s25  ;;  %p1838_p6 = scmp.lt.s32.totalorder %s1829_s25, %s1829_s25 }
  0x2b   : > { %p1832_p8 = pnand %p1830_p7, %p2152_p0  ;;  %p1839_p5 = por %p1838_p6, %p1837_p9 }
  0x2d   : > { %p1833_p11 = pneg %p1832_p8 }
  0x2f   : > { %p1840_p10 = pnand %p1839_p5, %p1833_p11 }
  0x31   : > { %1843 = shalt.err (!%p1840_p10)
}
  0x32   : > { %s2038_s26 = smov 256   ;;  %s2039_s6 = smov 16  }
  0x33   : > { %1652 = dma.hbm_to_vmem [thread:$0]  (!%p2138_p12), %s2546_s1, 4096, %s192_s7, [#allocation6], %s2038_s26, %s2038_s26, %s2039_s6  }
  0x34   : > { %s1844_s14 = scalar_lea.hbm %s2532_s0, 2048 }
  0x35   : > { %p1845_p13 = scmp.ne.s32.totalorder %s2532_s0, %s1844_s14  ;;  %p1851_p9 = scmp.lt.u32.totalorder %s1844_s14, %s2532_s0 }
  0x37   : > { %p1847_p5 = pnand %p1845_p13, %p2152_p0 }
  0x39   : > { %p1848_p6 = pneg %p1847_p5 }
  0x3b   : > { %p1853_p10 = pnand %p1851_p9, %p1848_p6 }
  0x3d   : > { %1856 = shalt.err (!%p1853_p10)
}
  0x3e   : > { %s1857_s7 = scalar_lea.vmem %s2142_s10, 2048  ;;  %p1865_p4 = scmp.lt.s32.totalorder %s2142_s10, %s2142_s10 }
  0x3f   : > { %p1858_p1 = scmp.ne.s32.totalorder %s2142_s10, %s1857_s7  ;;  %p1866_p7 = scmp.lt.s32.totalorder %s1857_s7, %s1857_s7 }
  0x41   : > { %p1860_p2 = pnand %p1858_p1, %p2152_p0  ;;  %p1867_p8 = por %p1866_p7, %p1865_p4 }
  0x43   : > { %p1861_p3 = pneg %p1860_p2 }
  0x45   : > { %p1868_p11 = pnand %p1867_p8, %p1861_p3 }
  0x47   : > { %1871 = shalt.err (!%p1868_p11)
}
  0x48   : > { %s2040_s26 = smov 128   ;;  %s2041_s6 = smov 8  }
  0x49   : > { %1649 = dma.hbm_to_vmem [thread:$0]  (!%p2138_p12), %s2532_s0, 2048, %s2142_s10, [#allocation3], %s2040_s26, %s2040_s26, %s2041_s6  }
  0x4a   : > { %s2042_s12 = smov [#allocation7]   ;;  %s2043_s14 = smov [#allocation8]  }
  0x4b   : > { %s204_s13 = sshll.u32 %s2042_s12, 4  ;;  %s217_s15 = sshll.u32 %s2043_s14, 4  ;;  %s205_s13 = int_to_ptr.vmem [resolvable:$true] %s204_s13  ;;  %s2191_s15 = int_to_ptr.vmem [resolvable:$true] %s217_s15 }
  0x4c   : > { %s1872_s25 = scalar_lea.hbm %s2534_s2, 2048 }
  0x4d   : > { %p1873_p13 = scmp.ne.s32.totalorder %s2534_s2, %s1872_s25  ;;  %p1879_p9 = scmp.lt.u32.totalorder %s1872_s25, %s2534_s2 }
  0x4f   : > { %p1875_p5 = pnand %p1873_p13, %p2152_p0 }
  0x51   : > { %p1876_p6 = pneg %p1875_p5 }
  0x53   : > { %p1881_p10 = pnand %p1879_p9, %p1876_p6 }
  0x55   : > { %1884 = shalt.err (!%p1881_p10)
}
  0x56   : > { %s1885_s11 = scalar_lea.vmem %s205_s13, 2048  ;;  %p1893_p4 = scmp.lt.s32.totalorder %s205_s13, %s205_s13 }
  0x57   : > { %p1886_p1 = scmp.ne.s32.totalorder %s205_s13, %s1885_s11  ;;  %p1894_p7 = scmp.lt.s32.totalorder %s1885_s11, %s1885_s11 }
  0x59   : > { %p1888_p2 = pnand %p1886_p1, %p2152_p0  ;;  %p1895_p8 = por %p1894_p7, %p1893_p4 }
  0x5b   : > { %p1889_p3 = pneg %p1888_p2 }
  0x5d   : > { %p1896_p11 = pnand %p1895_p8, %p1889_p3 }
  0x5f   : > { %1899 = shalt.err (!%p1896_p11)
}
  0x60   : > { %1655 = dma.hbm_to_vmem [thread:$0]  (!%p2138_p12), %s2534_s2, 2048, %s205_s13, [#allocation6], %s2040_s26, %s2040_s26, %s2041_s6  }
  0x61   : > { %s1900_s23 = scalar_lea.hbm %s2535_s3, 2048 }
  0x62   : > { %p1901_p13 = scmp.ne.s32.totalorder %s2535_s3, %s1900_s23  ;;  %p1907_p9 = scmp.lt.u32.totalorder %s1900_s23, %s2535_s3 }
  0x64   : > { %p1903_p5 = pnand %p1901_p13, %p2152_p0 }
  0x66   : > { %p1904_p6 = pneg %p1903_p5 }
  0x68   : > { %p1909_p10 = pnand %p1907_p9, %p1904_p6 }
  0x6a   : > { %1912 = shalt.err (!%p1909_p10)
}
  0x6b   : > { %s1913_s26 = scalar_lea.vmem %s2191_s15, 2048  ;;  %p1921_p4 = scmp.lt.s32.totalorder %s2191_s15, %s2191_s15 }
  0x6c   : > { %p1914_p1 = scmp.ne.s32.totalorder %s2191_s15, %s1913_s26  ;;  %p1922_p7 = scmp.lt.s32.totalorder %s1913_s26, %s1913_s26 }
  0x6e   : > { %p1916_p2 = pnand %p1914_p1, %p2152_p0  ;;  %p1923_p8 = por %p1922_p7, %p1921_p4 }
  0x70   : > { %p1917_p3 = pneg %p1916_p2 }
  0x72   : > { %p1924_p11 = pnand %p1923_p8, %p1917_p3 }
  0x74   : > { %1927 = shalt.err (!%p1924_p11)
}
  0x75   : > { %s2044_s6 = smov 64   ;;  %s2045_s13 = smov 4  }
  0x76   : > { %1658 = dma.hbm_to_vmem [thread:$0]  (!%p2138_p12), %s2535_s3, 2048, %s2191_s15, [#allocation9], %s2044_s6, %s2044_s6, %s2045_s13  }
  0x77   : > { %p2548_p13 = scmp.ne.s32.totalorder %s2544_s30, 0 }
  0x78   : > { %p2549_p0 = scmp.eq.s32.totalorder (!%p2548_p13), %s2102_s22, 0 }
  0x79   : > { %233 = sbr.rel (%p2548_p13) target bundleno = 1483 (0x5cb), region = 36 }
  0x80   : > { %2001 = dma.done.wait (%p2549_p0), [#allocation3], 2048   ;;  %p2550_p5 = pmov %p2549_p0 }
  0x81   : > { %p2551_p6 = pmov %p2549_p0 }
  0x82   : > { %2003 = vsyncadd (%p2550_p5), [#allocation3], 4294965248 }
  0x83   : > { %2005 = dma.done.wait (%p2551_p6), [#allocation6], 6144   ;;  %p2552_p9 = pmov %p2549_p0 }
  0x84   : > { %p2553_p10 = pmov %p2549_p0 }
  0x85   : > { %2007 = vsyncadd (%p2552_p9), [#allocation6], 4294961152 }
  0x86   : > { %2009 = dma.done.wait (%p2553_p10), [#allocation9], 2048   ;;  %p2554_p12 = pmov %p2549_p0 }
  0x87   : > { %v2046_v0 = vmov 0   ;;  %v1720_v1 = vld [vmem:[#allocation5 + $0x4] ss:$16 sps:$4 sm:$0xff]   ;;  %v1722_v2 = vld [vmem:[#allocation5] ss:$16 sps:$4 sm:$0xff]   ;;  %v275_v18 = vld [vmem:[#allocation2 + $0x8] sm:$0xff] }
  0x88   : > { %2011 = vsyncadd (%p2554_p12), [#allocation9], 4294965248  ;;  %526 = vmatprep.mubr.bf16.mxu0 %v2046_v0  ;;  %639 = vmatprep.mubr.bf16.mxu1 %v2046_v0  ;;  %v1723_v3 = vld [vmem:[#allocation5 + $0x24] ss:$16 sps:$4 sm:$0xff]   ;;  %v1725_v4 = vld [vmem:[#allocation5 + $0x20] ss:$16 sps:$4 sm:$0xff]  }
  0x89   : > { %494 = vmatprep.subr.bf16.mxu0 %v1720_v1  ;;  %v1726_v5 = vld [vmem:[#allocation5 + $0x44] ss:$16 sps:$4 sm:$0xff]   ;;  %v1728_v6 = vld [vmem:[#allocation5 + $0x40] ss:$16 sps:$4 sm:$0xff]   ;;  %v1768_v20 = vld [vmem:[#allocation5 + $0xc] ss:$16 sps:$4 sm:$0xff]  }
  0x8a   : > { %495 = vmatpush1.bf16.msra.mxu0 %v1722_v2  ;;  %v1729_v7 = vld [vmem:[#allocation5 + $0x64] ss:$16 sps:$4 sm:$0xff]   ;;  %v1731_v8 = vld [vmem:[#allocation5 + $0x60] ss:$16 sps:$4 sm:$0xff]   ;;  %v1770_v21 = vld [vmem:[#allocation5 + $0x8] ss:$16 sps:$4 sm:$0xff]   ;;  %607 = vmatprep.subr.bf16.mxu1 %v1768_v20 }
  0x8b   : > { %496 = vmatprep.subr.bf16.mxu0 %v1723_v3  ;;  %v1732_v9 = vld [vmem:[#allocation5 + $0x84] ss:$16 sps:$4 sm:$0xff]   ;;  %v1734_v10 = vld [vmem:[#allocation5 + $0x80] ss:$16 sps:$4 sm:$0xff]   ;;  %v1771_v22 = vld [vmem:[#allocation5 + $0x2c] ss:$16 sps:$4 sm:$0xff]   ;;  %608 = vmatpush1.bf16.msra.mxu1 %v1770_v21 }
  0x8c   : > { %v1735_v11 = vld [vmem:[#allocation5 + $0xa4] ss:$16 sps:$4 sm:$0xff]   ;;  %v1737_v12 = vld [vmem:[#allocation5 + $0xa0] ss:$16 sps:$4 sm:$0xff]   ;;  %v1773_v25 = vld [vmem:[#allocation5 + $0x28] ss:$16 sps:$4 sm:$0xff]   ;;  %609 = vmatprep.subr.bf16.mxu1 %v1771_v22 }
  0x8d   : > { %v1738_v13 = vld [vmem:[#allocation5 + $0xc4] ss:$16 sps:$4 sm:$0xff]   ;;  %v1740_v14 = vld [vmem:[#allocation5 + $0xc0] ss:$16 sps:$4 sm:$0xff]   ;;  %v1774_v27 = vld [vmem:[#allocation5 + $0x4c] ss:$16 sps:$4 sm:$0xff]  }
  0x8e   : > { %497 = vmatpush1.bf16.msra.mxu0 %v1725_v4  ;;  %v1741_v15 = vld [vmem:[#allocation5 + $0xe4] ss:$16 sps:$4 sm:$0xff]   ;;  %v1743_v16 = vld [vmem:[#allocation5 + $0xe0] ss:$16 sps:$4 sm:$0xff]   ;;  %v277_v29 = vld [vmem:[#allocation2 + $0x18] sm:$0xff]  ;;  %s1417_s30 = sshll.u32 %s2102_s22, 3 }
  0x8f   : > { %498 = vmatprep.subr.bf16.mxu0 %v1726_v5  ;;  %v274_v17 = vld [vmem:[#allocation2] sm:$0xff]  ;;  %v1749_v26 = vld [vmem:[#allocation7 + $0x14] ss:$8 sps:$4 sm:$0xff]   ;;  %v1747_v30 = vld [vmem:[#allocation7 + $0x10] ss:$8 sps:$4 sm:$0xff]   ;;  %610 = vmatpush1.bf16.msra.mxu1 %v1773_v25  ;;  %s299_s8 = scalar_lea.vmem [#allocation2], %s1417_s30 }
  0x90   : > { %v1746_v19 = vld [vmem:[#allocation7 + $0x4] ss:$8 sps:$4 sm:$0xff]   ;;  %v2250_v23 = vpack.c.bf16 %v275_v18, %v274_v17  ;;  %v1744_v24 = vld [vmem:[#allocation7] ss:$8 sps:$4 sm:$0xff]   ;;  %v276_v28 = vld [vmem:[#allocation2 + $0x10] sm:$0xff]  ;;  %611 = vmatprep.subr.bf16.mxu1 %v1774_v27  ;;  %vm2048_vm0 = vmmov 0  }
  0x91   : > { %v1776_v31 = vld [vmem:[#allocation5 + $0x48] ss:$16 sps:$4 sm:$0xff]   ;;  %v1777_v32 = vld [vmem:[#allocation5 + $0x6c] ss:$16 sps:$4 sm:$0xff]   ;;  %v2254_v36 = vpack.c.bf16 %v277_v29, %v276_v28  ;;  %v278_v40 = vld [vmem:[#allocation2 + $0x20] sm:$0xff]  ;;  %s2447_s16 = sand.u32 1, %s2026_s19  }
  0x92   : > { %499 = vmatpush1.bf16.msra.mxu0 %v1728_v6  ;;  %v1752_v33 = vld [vmem:[#allocation7 + $0x24] ss:$8 sps:$4 sm:$0xff]   ;;  %v1750_v34 = vld [vmem:[#allocation7 + $0x20] ss:$8 sps:$4 sm:$0xff]   ;;  %v1755_v37 = vld [vmem:[#allocation7 + $0x34] ss:$8 sps:$4 sm:$0xff]  }
  0x93   : > { %500 = vmatprep.subr.bf16.mxu0 %v1729_v7  ;;  %v1779_v35 = vld [vmem:[#allocation5 + $0x68] ss:$16 sps:$4 sm:$0xff]   ;;  %612 = vmatpush1.bf16.msra.mxu1 %v1776_v31  ;;  %v1780_v38 = vld [vmem:[#allocation5 + $0x8c] ss:$16 sps:$4 sm:$0xff]   ;;  %v280_v50 = vld [vmem:[#allocation2 + $0x30] sm:$0xff]  ;;  %s1415_s15 = sshll.u32 %s2447_s16, 3 }
  0x94   : > { %613 = vmatprep.subr.bf16.mxu1 %v1777_v32  ;;  %v1782_v39 = vld [vmem:[#allocation5 + $0x88] ss:$16 sps:$4 sm:$0xff]   ;;  %v1783_v43 = vld [vmem:[#allocation5 + $0xac] ss:$16 sps:$4 sm:$0xff]   ;;  %v282_v60 = vld [vmem:[#allocation2 + $0x40] sm:$0xff]  ;;  %s2452_s12 = scalar_lea.vmem [#allocation11], %s1415_s15 }
  0x95   : > { %v279_v41 = vld [vmem:[#allocation2 + $0x28] sm:$0xff]  ;;  %v1753_v42 = vld [vmem:[#allocation7 + $0x30] ss:$8 sps:$4 sm:$0xff]   ;;  %v1761_v48 = vld [vmem:[#allocation7 + $0x54] ss:$8 sps:$4 sm:$0xff]   ;;  %s1484_s14 = sshll.u32 %s2102_s22, 7 }
  0x96   : > { %501 = vmatpush1.bf16.msra.mxu0 %v1731_v8  ;;  %v1758_v44 = vld [vmem:[#allocation7 + $0x44] ss:$8 sps:$4 sm:$0xff]   ;;  %v1785_v45 = vld [vmem:[#allocation5 + $0xa8] ss:$16 sps:$4 sm:$0xff]   ;;  %v292_v47 = vpack.c.bf16 %v279_v41, %v278_v40  ;;  %v1767_v59 = vld [vmem:[#allocation7 + $0x74] ss:$8 sps:$4 sm:$0xff]   ;;  %s2461_s25 = scalar_lea.hbm %s2537_s5, %s1484_s14 }
  0x97   : > { %502 = vmatprep.subr.bf16.mxu0 %v1732_v9  ;;  %614 = vmatpush1.bf16.msra.mxu1 %v1779_v35  ;;  %v1756_v46 = vld [vmem:[#allocation7 + $0x40] ss:$8 sps:$4 sm:$0xff]   ;;  %v1786_v49 = vld [vmem:[#allocation5 + $0xcc] ss:$16 sps:$4 sm:$0xff]   ;;  %v1759_v53 = vld [vmem:[#allocation7 + $0x50] ss:$8 sps:$4 sm:$0xff]  }
  0x98   : > { %615 = vmatprep.subr.bf16.mxu1 %v1780_v38  ;;  %v1788_v51 = vld [vmem:[#allocation5 + $0xc8] ss:$16 sps:$4 sm:$0xff]   ;;  %v1789_v54 = vld [vmem:[#allocation5 + $0xec] ss:$16 sps:$4 sm:$0xff]   ;;  %v284_v1 = vld [vmem:[#allocation2 + $0x50] sm:$0xff]  ;;  %s1282_s7 = sshll.u32 %s2452_s12, 4  ;;  %s1283_s7 = int_to_ptr.vmem [resolvable:$true] %s1282_s7 }
  0x99   : > { %v281_v52 = vld [vmem:[#allocation2 + $0x38] sm:$0xff]  ;;  %v1764_v55 = vld [vmem:[#allocation7 + $0x64] ss:$8 sps:$4 sm:$0xff]   ;;  %v1762_v58 = vld [vmem:[#allocation7 + $0x60] ss:$8 sps:$4 sm:$0xff]   ;;  %s1256_s9 = scalar_lea.sflag [#allocation12], %s2447_s16 }
  0x9a   : > { %503 = vmatpush1.bf16.msra.mxu0 %v1734_v10  ;;  %v293_v56 = vpack.c.bf16 %v281_v52, %v280_v50  ;;  %v1791_v57 = vld [vmem:[#allocation5 + $0xe8] ss:$16 sps:$4 sm:$0xff]   ;;  %v286_v4 = vld [vmem:[#allocation2 + $0x60] sm:$0xff]  ;;  %v288_v7 = vld [vmem:[#allocation2 + $0x70] sm:$0xff]  ;;  %s1928_s10 = scalar_lea.vmem %s1283_s7, 128  ;;  %p2555_p2 = scmp.ne.s32.totalorder %s2542_s28, 0 }
  0x9b   : > { %504 = vmatprep.subr.bf16.mxu0 %v1735_v11  ;;  %616 = vmatpush1.bf16.msra.mxu1 %v1782_v39  ;;  %v283_v61 = vld [vmem:[#allocation2 + $0x48] sm:$0xff]  ;;  %v1765_v62 = vld [vmem:[#allocation7 + $0x70] ss:$8 sps:$4 sm:$0xff]   ;;  %v300_v10 = vld [vmem:[%s299_s8] sm:$0xff]  ;;  %p1929_p1 = scmp.ne.s32.totalorder %s1283_s7, %s1928_s10  ;;  %s2049_s26 = smov [#allocation11]  }
  0x9c   : > { %617 = vmatprep.subr.bf16.mxu1 %v1783_v43  ;;  %v294_v63 = vpack.c.bf16 %v283_v61, %v282_v60  ;;  %v285_v2 = vld [vmem:[#allocation2 + $0x58] sm:$0xff]  ;;  %v287_v5 = vld [vmem:[#allocation2 + $0x68] sm:$0xff]  ;;  %v301_v11 = vpack.c.bf16 %v300_v10, %v300_v10  ;;  %s1932_s6 = sshll.u32 %s2049_s26, 4  ;;  %s1933_s6 = int_to_ptr.vmem [resolvable:$false] %s1932_s6 }
  0x9d   : > { %v295_v3 = vpack.c.bf16 %v285_v2, %v284_v1  ;;  %v296_v6 = vpack.c.bf16 %v287_v5, %v286_v4  ;;  %v289_v8 = vld [vmem:[#allocation2 + $0x78] sm:$0xff]  ;;  %p1930_p3 = pnand %p1929_p1, %p2555_p2  ;;  %s1934_s13 = scalar_lea.vmem %s1933_s6, 256 }
  0x9e   : > { %505 = vmatpush1.bf16.msra.mxu0 %v1737_v12  ;;  %v297_v9 = vpack.c.bf16 %v289_v8, %v288_v7  ;;  %v2047_v12 = vmov 0.0   ;;  %p1935_p7 = scmp.lt.s32.totalorder %s1283_s7, %s1933_s6  ;;  %p1936_p8 = scmp.lt.s32.totalorder %s1934_s13, %s1928_s10 }
  0x9f   : > { %506 = vmatprep.subr.bf16.mxu0 %v1738_v13  ;;  %618 = vmatpush1.bf16.msra.mxu1 %v1785_v45  ;;  %p1931_p4 = pneg %p1930_p3 }
  0xa0   : > { %619 = vmatprep.subr.bf16.mxu1 %v1786_v49  ;;  %p1937_p11 = por %p1936_p8, %p1935_p7 }
  0xa2   : > { %507 = vmatpush1.bf16.msra.mxu0 %v1740_v14  ;;  %p1938_p13 = pnand %p1937_p11, %p1931_p4 }
  0xa3   : > { %508 = vmatprep.subr.bf16.mxu0 %v1741_v15  ;;  %620 = vmatpush1.bf16.msra.mxu1 %v1788_v51 }
  0xa4   : > { %621 = vmatprep.subr.bf16.mxu1 %v1789_v54 }
  0xa6   : > { %509 = vmatpush1.bf16.msra.mxu0 %v1743_v16 }
  0xa7   : > { %816 = vmatprep.subr.bf16.mxu0 %v1746_v19  ;;  %622 = vmatpush1.bf16.msra.mxu1 %v1791_v57 }
  0xa8   : > { %1546 = vmatprep.subr.bf16.mxu1 %v2047_v12 }
  0xa9   : > { %527 = vmatmul.mubr.bf16.vlgmr.msra.gmra.mrb[0].mxu0 %v2250_v23 }
  0xaa   : > { %817 = vmatpush1.bf16.msra.mxu0 %v1744_v24  ;;  %536 = vmatprep.mubr.bf16.mxu0 %v2046_v0 }
  0xab   : > { %818 = vmatprep.subr.bf16.mxu0 %v1749_v26  ;;  %640 = vmatmul.mubr.bf16.vlgmr.msra.gmra.mrb[0].mxu1 %v2250_v23 }
  0xac   : > { %649 = vmatprep.mubr.bf16.mxu1 %v2046_v0 }
  0xae   : > { %819 = vmatpush1.bf16.msra.mxu0 %v1747_v30 }
  0xaf   : > { %820 = vmatprep.subr.bf16.mxu0 %v1752_v33 }
  0xb1   : > { %537 = vmatmul.mubr.bf16.gmra.mrb[4].mxu0 %v2254_v36 }
  0xb2   : > { %546 = vmatprep.mubr.bf16.mxu0 %v2046_v0  ;;  %821 = vmatpush1.bf16.msra.mxu0 %v1750_v34 }
  0xb3   : > { %822 = vmatprep.subr.bf16.mxu0 %v1755_v37  ;;  %650 = vmatmul.mubr.bf16.gmra.mrb[4].mxu1 %v2254_v36 }
  0xb4   : > { %659 = vmatprep.mubr.bf16.mxu1 %v2046_v0 }
  0xb6   : > { %823 = vmatpush1.bf16.msra.mxu0 %v1753_v42 }
  0xb7   : > { %824 = vmatprep.subr.bf16.mxu0 %v1758_v44 }
  0xb9   : > { %547 = vmatmul.mubr.bf16.gmra.mrb[8].mxu0 %v292_v47 }
  0xba   : > { %556 = vmatprep.mubr.bf16.mxu0 %v2046_v0  ;;  %825 = vmatpush1.bf16.msra.mxu0 %v1756_v46 }
  0xbb   : > { %826 = vmatprep.subr.bf16.mxu0 %v1761_v48  ;;  %660 = vmatmul.mubr.bf16.gmra.mrb[8].mxu1 %v292_v47 }
  0xbc   : > { %669 = vmatprep.mubr.bf16.mxu1 %v2046_v0 }
  0xbe   : > { %827 = vmatpush1.bf16.msra.mxu0 %v1759_v53 }
  0xbf   : > { %828 = vmatprep.subr.bf16.mxu0 %v1764_v55 }
  0xc1   : > { %557 = vmatmul.mubr.bf16.gmra.mrb[12].mxu0 %v293_v56 }
  0xc2   : > { %566 = vmatprep.mubr.bf16.mxu0 %v2046_v0  ;;  %829 = vmatpush1.bf16.msra.mxu0 %v1762_v58 }
  0xc3   : > { %830 = vmatprep.subr.bf16.mxu0 %v1767_v59  ;;  %670 = vmatmul.mubr.bf16.gmra.mrb[12].mxu1 %v293_v56 }
  0xc4   : > { %679 = vmatprep.mubr.bf16.mxu1 %v2046_v0 }
  0xc6   : > { %831 = vmatpush1.bf16.msra.mxu0 %v1765_v62 }
  0xc7   : > { %1566 = vmatprep.subr.bf16.mxu0 %v2047_v12 }
  0xc9   : > { %567 = vmatmul.mubr.bf16.gmra.mrb[16].mxu0 %v294_v63 }
  0xca   : > { %576 = vmatprep.mubr.bf16.mxu0 %v2046_v0 }
  0xcb   : > { %680 = vmatmul.mubr.bf16.gmra.mrb[16].mxu1 %v294_v63 }
  0xcc   : > { %689 = vmatprep.mubr.bf16.mxu1 %v2046_v0 }
  0xd1   : > { %577 = vmatmul.mubr.bf16.gmra.mrb[20].mxu0 %v295_v3 }
  0xd2   : > { %586 = vmatprep.mubr.bf16.mxu0 %v2046_v0 }
  0xd3   : > { %690 = vmatmul.mubr.bf16.gmra.mrb[20].mxu1 %v295_v3 }
  0xd4   : > { %699 = vmatprep.mubr.bf16.mxu1 %v2046_v0 }
  0xd9   : > { %587 = vmatmul.mubr.bf16.gmra.mrb[24].mxu0 %v296_v6 }
  0xda   : > { %596 = vmatprep.mubr.bf16.mxu0 %v2046_v0 }
  0xdb   : > { %700 = vmatmul.mubr.bf16.gmra.mrb[24].mxu1 %v296_v6 }
  0xdc   : > { %709 = vmatprep.mubr.bf16.mxu1 %v2046_v0 }
  0xe1   : > { %597 = vmatmul.mubr.bf16.gmra.mrb[28].mxu0 %v297_v9 }
  0xe2   : > { %848 = vmatprep.mubr.bf16.mxu0 %v2046_v0 }
  0xe3   : > { %710 = vmatmul.mubr.bf16.gmra.mrb[28].mxu1 %v297_v9 }
  0xe4   : > { %1562 = vmatprep.mubr.msk.bf16.mxu1 %vm2048_vm0, %v2047_v12 }
  0xe9   : > { %849 = vmatmul.mubr.bf16.vlgmr.msra.gmra.mrb[32].mxu0 %v301_v11 }
  0xea   : > { %1582 = vmatprep.mubr.msk.bf16.mxu0 %vm2048_vm0, %v2047_v12 }
 0x17c   : > { %v528_v13 = vpop.f32.mrb[0].mxu0 }
 0x17d   : > { %v2280_v14 = vpop.f32.mrb[1].mxu0 }
 0x17e   : > { %v532_v15 = vpop.f32.mrb[2].mxu0  ;;  %v641_v35 = vpop.f32.mrb[0].mxu1 }
 0x17f   : > { %v861_v16 = vpack.c.bf16 %v532_v15, %v528_v13  ;;  %v2282_v17 = vpop.f32.mrb[3].mxu0  ;;  %v2307_v37 = vpop.f32.mrb[1].mxu1 }
 0x180   : > { %v970_v0 = vpack.c.bf16 %v2282_v17, %v2280_v14  ;;  %v645_v38 = vpop.f32.mrb[2].mxu1 }
 0x181   : > { %1547 = vmatpush3.bf16.xpose.msra.mxu1 %v861_v16  ;;  %v921_v39 = vpack.c.bf16 %v645_v38, %v641_v35  ;;  %v2310_v40 = vpop.f32.mrb[3].mxu1 }
 0x182   : > { %1548 = vmatprep.subr.bf16.mxu1 %v2047_v12  ;;  %v1030_v41 = vpack.c.bf16 %v2310_v40, %v2307_v37 }
 0x183   : > { %1567 = vmatpush3.bf16.msra.mxu0 %v921_v39 }
 0x184   : > { %v538_v18 = vpop.f32.mrb[4].mxu0  ;;  %1568 = vmatprep.subr.bf16.mxu0 %v2047_v12 }
 0x185   : > { %v2287_v19 = vpop.f32.mrb[5].mxu0 }
 0x186   : > { %v542_v20 = vpop.f32.mrb[6].mxu0  ;;  %v651_v47 = vpop.f32.mrb[4].mxu1 }
 0x187   : > { %v862_v21 = vpack.c.bf16 %v542_v20, %v538_v18  ;;  %v2289_v22 = vpop.f32.mrb[7].mxu0  ;;  %v2321_v49 = vpop.f32.mrb[5].mxu1 }
 0x188   : > { %v971_v23 = vpack.c.bf16 %v2289_v22, %v2287_v19  ;;  %v655_v50 = vpop.f32.mrb[6].mxu1 }
 0x189   : > { %1549 = vmatpush3.bf16.xpose.msra.mxu1 %v862_v21  ;;  %v922_v51 = vpack.c.bf16 %v655_v50, %v651_v47  ;;  %v2324_v52 = vpop.f32.mrb[7].mxu1 }
 0x18a   : > { %1550 = vmatprep.subr.bf16.mxu1 %v2047_v12  ;;  %v1031_v53 = vpack.c.bf16 %v2324_v52, %v2321_v49  ;;  %v1792_v52 = vld [vmem:[#allocation8 + $0x40] sm:$0xff]  }
 0x18b   : > { %1569 = vmatpush3.bf16.msra.mxu0 %v922_v51 }
 0x18c   : > { %v548_v24 = vpop.f32.mrb[8].mxu0  ;;  %1570 = vmatprep.subr.bf16.mxu0 %v2047_v12 }
 0x18d   : > { %v2294_v25 = vpop.f32.mrb[9].mxu0 }
 0x18e   : > { %v552_v26 = vpop.f32.mrb[10].mxu0  ;;  %v661_v59 = vpop.f32.mrb[8].mxu1 }
 0x18f   : > { %v863_v27 = vpack.c.bf16 %v552_v26, %v548_v24  ;;  %v2296_v28 = vpop.f32.mrb[11].mxu0  ;;  %v2335_v61 = vpop.f32.mrb[9].mxu1 }
 0x190   : > { %v972_v29 = vpack.c.bf16 %v2296_v28, %v2294_v25  ;;  %v665_v62 = vpop.f32.mrb[10].mxu1  ;;  %v857_v28 = vlaneseq }
 0x191   : > { %1551 = vmatpush3.bf16.xpose.msra.mxu1 %v863_v27  ;;  %v923_v63 = vpack.c.bf16 %v665_v62, %v661_v59  ;;  %v2338_v1 = vpop.f32.mrb[11].mxu1 }
 0x192   : > { %1552 = vmatprep.subr.bf16.mxu1 %v2047_v12  ;;  %v1032_v2 = vpack.c.bf16 %v2338_v1, %v2335_v61  ;;  %v1795_v61 = vld [vmem:[#allocation8 + $0x8] sm:$0xff]   ;;  %v1796_v1 = vld [vmem:[#allocation8 + $0x50] sm:$0xff]  }
 0x193   : > { %1571 = vmatpush3.bf16.msra.mxu0 %v923_v63 }
 0x194   : > { %v558_v30 = vpop.f32.mrb[12].mxu0  ;;  %1572 = vmatprep.subr.bf16.mxu0 %v2047_v12 }
 0x195   : > { %v2301_v31 = vpop.f32.mrb[13].mxu0 }
 0x196   : > { %v562_v32 = vpop.f32.mrb[14].mxu0  ;;  %v671_v8 = vpop.f32.mrb[12].mxu1 }
 0x197   : > { %v864_v33 = vpack.c.bf16 %v562_v32, %v558_v30  ;;  %v2303_v34 = vpop.f32.mrb[15].mxu0  ;;  %v2349_v10 = vpop.f32.mrb[13].mxu1 }
 0x198   : > { %v973_v36 = vpack.c.bf16 %v2303_v34, %v2301_v31  ;;  %v675_v11 = vpop.f32.mrb[14].mxu1 }
 0x199   : > { %1553 = vmatpush3.bf16.xpose.msra.mxu1 %v864_v33  ;;  %v924_v13 = vpack.c.bf16 %v675_v11, %v671_v8  ;;  %v2352_v15 = vpop.f32.mrb[15].mxu1 }
 0x19a   : > { %1554 = vmatprep.subr.bf16.mxu1 %v2047_v12  ;;  %v1033_v16 = vpack.c.bf16 %v2352_v15, %v2349_v10  ;;  %v1798_v10 = vld [vmem:[#allocation8 + $0x58] sm:$0xff]  }
 0x19b   : > { %1573 = vmatpush3.bf16.msra.mxu0 %v924_v13  ;;  %v1799_v15 = vld [vmem:[#allocation8 + $0x18] sm:$0xff]  }
 0x19c   : > { %v568_v42 = vpop.f32.mrb[16].mxu0  ;;  %1574 = vmatprep.subr.bf16.mxu0 %v2047_v12 }
 0x19d   : > { %v2314_v43 = vpop.f32.mrb[17].mxu0 }
 0x19e   : > { %v572_v44 = vpop.f32.mrb[18].mxu0  ;;  %v681_v27 = vpop.f32.mrb[16].mxu1 }
 0x19f   : > { %v865_v45 = vpack.c.bf16 %v572_v44, %v568_v42  ;;  %v2317_v46 = vpop.f32.mrb[19].mxu0  ;;  %v2357_v32 = vpop.f32.mrb[17].mxu1 }
 0x1a0   : > { %v974_v48 = vpack.c.bf16 %v2317_v46, %v2314_v43  ;;  %v685_v33 = vpop.f32.mrb[18].mxu1 }
 0x1a1   : > { %1555 = vmatpush3.bf16.xpose.msra.mxu1 %v865_v45  ;;  %v925_v35 = vpack.c.bf16 %v685_v33, %v681_v27  ;;  %v2360_v38 = vpop.f32.mrb[19].mxu1 }
 0x1a2   : > { %1556 = vmatprep.subr.bf16.mxu1 %v2047_v12  ;;  %v1034_v39 = vpack.c.bf16 %v2360_v38, %v2357_v32  ;;  %v1801_v32 = vld [vmem:[#allocation8 + $0x20] sm:$0xff]   ;;  %v1802_v38 = vld [vmem:[#allocation8 + $0x68] sm:$0xff]  }
 0x1a3   : > { %1575 = vmatpush3.bf16.msra.mxu0 %v925_v35 }
 0x1a4   : > { %v578_v54 = vpop.f32.mrb[20].mxu0  ;;  %1576 = vmatprep.subr.bf16.mxu0 %v2047_v12 }
 0x1a5   : > { %v2328_v55 = vpop.f32.mrb[21].mxu0 }
 0x1a6   : > { %v582_v56 = vpop.f32.mrb[22].mxu0  ;;  %v691_v51 = vpop.f32.mrb[20].mxu1 }
 0x1a7   : > { %v866_v57 = vpack.c.bf16 %v582_v56, %v578_v54  ;;  %v2331_v58 = vpop.f32.mrb[23].mxu0  ;;  %v2365_v54 = vpop.f32.mrb[21].mxu1 }
 0x1a8   : > { %v975_v60 = vpack.c.bf16 %v2331_v58, %v2328_v55  ;;  %v695_v56 = vpop.f32.mrb[22].mxu1 }
 0x1a9   : > { %1557 = vmatpush3.bf16.xpose.msra.mxu1 %v866_v57  ;;  %v926_v57 = vpack.c.bf16 %v695_v56, %v691_v51  ;;  %v2373_v59 = vpop.f32.mrb[23].mxu1 }
 0x1aa   : > { %1558 = vmatprep.subr.bf16.mxu1 %v2047_v12  ;;  %v1035_v62 = vpack.c.bf16 %v2373_v59, %v2365_v54 }
 0x1ab   : > { %1577 = vmatpush3.bf16.msra.mxu0 %v926_v57 }
 0x1ac   : > { %v588_v3 = vpop.f32.mrb[24].mxu0  ;;  %1578 = vmatprep.subr.bf16.mxu0 %v2047_v12 }
 0x1ad   : > { %v2342_v4 = vpop.f32.mrb[25].mxu0 }
 0x1ae   : > { %v592_v5 = vpop.f32.mrb[26].mxu0  ;;  %v701_v63 = vpop.f32.mrb[24].mxu1 }
 0x1af   : > { %v867_v6 = vpack.c.bf16 %v592_v5, %v588_v3  ;;  %v2345_v7 = vpop.f32.mrb[27].mxu0  ;;  %v2378_v3 = vpop.f32.mrb[25].mxu1 }
 0x1b0   : > { %v976_v9 = vpack.c.bf16 %v2345_v7, %v2342_v4  ;;  %v705_v14 = vpop.f32.mrb[26].mxu1 }
 0x1b1   : > { %1559 = vmatpush3.bf16.xpose.msra.mxu1 %v867_v6  ;;  %v927_v17 = vpack.c.bf16 %v705_v14, %v701_v63 }
 0x1b2   : > { %1560 = vmatprep.subr.bf16.mxu1 %v2047_v12 }
 0x1b3   : > { %1579 = vmatpush3.bf16.msra.mxu0 %v927_v17 }
 0x1b4   : > { %v598_v18 = vpop.f32.mrb[28].mxu0  ;;  %1580 = vmatprep.subr.bf16.mxu0 %v2047_v12 }
 0x1b5   : > { %v600_v20 = vpop.f32.mrb[29].mxu0 }
 0x1b6   : > { %v602_v21 = vpop.f32.mrb[30].mxu0 }
 0x1b7   : > { %v868_v24 = vpack.c.bf16 %v602_v21, %v598_v18  ;;  %v604_v26 = vpop.f32.mrb[31].mxu0 }
 0x1b8   : > { %v977_v30 = vpack.c.bf16 %v604_v26, %v600_v20 }
 0x1b9   : > { %1561 = vmatpush3.bf16.xpose.msra.mxu1 %v868_v24 }
 0x1ba   : > { %1586 = vmatprep.subr.bf16.mxu1 %v2047_v12 }
 0x1bc   : > { %v850_v42 = vpop.f32.mrb[32].mxu0 }
 0x1bd   : > { %v860_v44 = vpack.c.bf16 %v850_v42, %v850_v42  ;;  %v852_v45 = vpop.f32.mrb[33].mxu0  ;;  %v1804_v42 = vld [vmem:[#allocation8 + $0x70] sm:$0xff]  }
 0x1be   : > { %v854_v47 = vpop.f32.mrb[34].mxu0  ;;  %v969_v25 = vpack.c.bf16 %v852_v45, %v852_v45  ;;  %v1806_v45 = vld [vmem:[#allocation8 + $0x78] sm:$0xff]  }
 0x1bf   : > { %v855_v50 = vpop.f32.mrb[35].mxu0  ;;  %v1807_v47 = vld [vmem:[#allocation8 + $0x38] sm:$0xff]  }
 0x1c0   : > { %1563 = vmatmul.mubr.bf16.vlgmr.msra.gmra.mrb[32].mxu1 %v860_v44  ;;  %v1805_v44 = vld [vmem:[#allocation8 + $0x30] sm:$0xff]  }
 0x1c1   : > { %1587 = vmatpush3.bf16.xpose.msra.mxu1 %v970_v0  ;;  %1602 = vmatprep.mubr.msk.bf16.mxu1 %vm2048_vm0, %v2047_v12  ;;  %v2384_v0 = vpop.f32.mrb[27].mxu1 }
 0x1c2   : > { %1588 = vmatprep.subr.bf16.mxu1 %v2047_v12  ;;  %v1036_v5 = vpack.c.bf16 %v2384_v0, %v2378_v3  ;;  %v711_v6 = vpop.f32.mrb[28].mxu1 }
 0x1c3   : > { %v2389_v8 = vpop.f32.mrb[29].mxu1 }
 0x1c4   : > { %v715_v19 = vpop.f32.mrb[30].mxu1 }
 0x1c5   : > { %v928_v22 = vpack.c.bf16 %v715_v19, %v711_v6 }
 0x1c7   : > { %1581 = vmatpush3.bf16.msra.mxu0 %v928_v22 }
 0x1c8   : > { %1606 = vmatprep.subr.bf16.mxu0 %v2047_v12 }
 0x1c9   : > { %1589 = vmatpush3.bf16.xpose.msra.mxu1 %v971_v23  ;;  %v2395_v23 = vpop.f32.mrb[31].mxu1 }
 0x1ca   : > { %1590 = vmatprep.subr.bf16.mxu1 %v2047_v12  ;;  %v1037_v11 = vpack.c.bf16 %v2395_v23, %v2389_v8 }
 0x1d1   : > { %1591 = vmatpush3.bf16.xpose.msra.mxu1 %v972_v29  ;;  %v858_v29 = vand.u32 127, %v857_v28 }
 0x1d2   : > { %1592 = vmatprep.subr.bf16.mxu1 %v2047_v12 }
 0x1d3   : > { %vm859_vm1 = vcmp.lt.s32.totalorder %v858_v29, 16 }
 0x1d9   : > { %1593 = vmatpush3.bf16.xpose.msra.mxu1 %v973_v36 }
 0x1da   : > { %1594 = vmatprep.subr.bf16.mxu1 %v2047_v12 }
 0x1e1   : > { %1595 = vmatpush3.bf16.xpose.msra.mxu1 %v974_v48 }
 0x1e2   : > { %1596 = vmatprep.subr.bf16.mxu1 %v2047_v12 }
 0x1e9   : > { %1597 = vmatpush3.bf16.xpose.msra.mxu1 %v975_v60 }
 0x1ea   : > { %1598 = vmatprep.subr.bf16.mxu1 %v2047_v12 }
 0x1f1   : > { %1599 = vmatpush3.bf16.xpose.msra.mxu1 %v976_v9 }
 0x1f2   : > { %1600 = vmatprep.subr.bf16.mxu1 %v2047_v12 }
 0x1f9   : > { %1601 = vmatpush3.bf16.xpose.msra.mxu1 %v977_v30 }
 0x200   : > { %1603 = vmatmul.mubr.bf16.vlgmr.msra.gmra.mrb[36].mxu1 %v969_v25 }
 0x293   : > { %v903_v31 = vpop.f32.mrb[32].mxu1 }
 0x294   : > { %v1564_v34 = vpop.f32.mrb[33].mxu1  ;;  %v909_v36 = vsel %vm859_vm1, %v903_v31, -1e+30 }
 0x295   : > { %910 = vmax.xlane.f32.xlu0 %v909_v36  ;;  %v906_v43 = vpop.f32.mrb[34].mxu1 }
 0x296   : > { %v1565_v46 = vpop.f32.mrb[35].mxu1 }
 0x2d3   : > { %v1012_v48 = vpop.f32.mrb[36].mxu1 }
 0x2d4   : > { %v1604_v55 = vpop.f32.mrb[37].mxu1  ;;  %v1018_v58 = vsel %vm859_vm1, %v1012_v48, -1e+30 }
 0x2d5   : > { %1019 = vmax.xlane.f32.xlu0 %v1018_v58  ;;  %v1015_v60 = vpop.f32.mrb[38].mxu1 }
 0x2d6   : > { %v1605_v4 = vpop.f32.mrb[39].mxu1 }
 0x322   : > { %v911_v7 = vpop.xlane.xlu0 %910 }
 0x323   : > { %v912_v9 = vsub.f32 %v909_v36, %v911_v7 }
 0x325   : > { %v913_v13 = vmul.f32 1.442695, %v912_v9 }
 0x327   : > { %1808 = vpow2.f32 %v913_v13 }
 0x331   : > { %v1809_v18 = vpop.eup %1808 }
 0x332   : > { %915 = vadd.xlane.f32.xlu1 %v1809_v18 }
 0x362   : > { %v1020_v20 = vpop.xlane.xlu0 %1019 }
 0x363   : > { %v1021_v21 = vsub.f32 %v1018_v58, %v1020_v20 }
 0x365   : > { %v1022_v24 = vmul.f32 1.442695, %v1021_v21 }
 0x367   : > { %1810 = vpow2.f32 %v1022_v24 }
 0x371   : > { %v1811_v26 = vpop.eup %1810 }
 0x372   : > { %1024 = vadd.xlane.f32.xlu1 %v1811_v26 }
 0x3bf   : > { %v916_v27 = vpop.xlane.xlu1 %915 }
 0x3c0   : > { %1812 = vrcp.f32 %v916_v27 }
 0x3ca   : > { %v1813_v30 = vpop.eup %1812 }
 0x3cb   : > { %v919_v33 = vmul.f32 %v1813_v30, %v1809_v18 }
 0x3cd   : > { %v920_v35 = vpack.c.bf16 %v919_v33, %v919_v33 }
 0x3cf   : > { %1583 = vmatmul.mubr.bf16.vlgmr.msra.gmra.mrb[36].mxu0 %v920_v35 }
 0x3d0   : > { %1607 = vmatpush3.bf16.msra.mxu0 %v1030_v41  ;;  %1622 = vmatprep.mubr.msk.bf16.mxu0 %vm2048_vm0, %v2047_v12 }
 0x3d1   : > { %1608 = vmatprep.subr.bf16.mxu0 %v2047_v12 }
 0x3d4   : > { %1609 = vmatpush3.bf16.msra.mxu0 %v1031_v53  ;;  %v1793_v53 = vld [vmem:[#allocation8] sm:$0xff]  }
 0x3d5   : > { %1610 = vmatprep.subr.bf16.mxu0 %v2047_v12 }
 0x3d8   : > { %1611 = vmatpush3.bf16.msra.mxu0 %v1032_v2  ;;  %v1797_v2 = vld [vmem:[#allocation8 + $0x10] sm:$0xff]  }
 0x3d9   : > { %1612 = vmatprep.subr.bf16.mxu0 %v2047_v12 }
 0x3dc   : > { %1613 = vmatpush3.bf16.msra.mxu0 %v1033_v16  ;;  %v1800_v16 = vld [vmem:[#allocation8 + $0x60] sm:$0xff]  }
 0x3dd   : > { %1614 = vmatprep.subr.bf16.mxu0 %v2047_v12 }
 0x3e0   : > { %1615 = vmatpush3.bf16.msra.mxu0 %v1034_v39  ;;  %v1803_v39 = vld [vmem:[#allocation8 + $0x28] sm:$0xff]  }
 0x3e1   : > { %1616 = vmatprep.subr.bf16.mxu0 %v2047_v12 }
 0x3e4   : > { %1617 = vmatpush3.bf16.msra.mxu0 %v1035_v62 }
 0x3e5   : > { %1618 = vmatprep.subr.bf16.mxu0 %v2047_v12 }
 0x3e8   : > { %1619 = vmatpush3.bf16.msra.mxu0 %v1036_v5 }
 0x3e9   : > { %1620 = vmatprep.subr.bf16.mxu0 %v2047_v12  ;;  %v1794_v12 = vld [vmem:[#allocation8 + $0x48] sm:$0xff]  }
 0x3ec   : > { %1621 = vmatpush3.bf16.msra.mxu0 %v1037_v11 }
 0x3ed   : > { %1524 = vmatprep.subr.bf16.mxu0 %v1792_v52 }
 0x3ff   : > { %v1025_v37 = vpop.xlane.xlu1 %1024 }
 0x400   : > { %1814 = vrcp.f32 %v1025_v37 }
 0x40a   : > { %v1815_v40 = vpop.eup %1814 }
 0x40b   : > { %v1028_v41 = vmul.f32 %v1815_v40, %v1811_v26 }
 0x40d   : > { %v1029_v49 = vpack.c.bf16 %v1028_v41, %v1028_v41  ;;  %1249 = vst [vmem:[%s2452_s12] sm:$0xff] %v1028_v41 }
 0x40f   : > { %1623 = vmatmul.mubr.bf16.vlgmr.msra.gmra.mrb[40].mxu0 %v1029_v49 }
 0x410   : > { %1525 = vmatpush3.bf16.msra.mxu0 %v1793_v53 }
 0x411   : > { %1526 = vmatprep.subr.bf16.mxu0 %v1794_v12 }
 0x414   : > { %1527 = vmatpush3.bf16.msra.mxu0 %v1795_v61 }
 0x415   : > { %1528 = vmatprep.subr.bf16.mxu0 %v1796_v1 }
 0x418   : > { %1529 = vmatpush3.bf16.msra.mxu0 %v1797_v2 }
 0x419   : > { %1530 = vmatprep.subr.bf16.mxu0 %v1798_v10 }
 0x41c   : > { %1531 = vmatpush3.bf16.msra.mxu0 %v1799_v15 }
 0x41d   : > { %1532 = vmatprep.subr.bf16.mxu0 %v1800_v16 }
 0x420   : > { %1533 = vmatpush3.bf16.msra.mxu0 %v1801_v32 }
 0x421   : > { %1534 = vmatprep.subr.bf16.mxu0 %v1802_v38 }
 0x424   : > { %1535 = vmatpush3.bf16.msra.mxu0 %v1803_v39 }
 0x425   : > { %1536 = vmatprep.subr.bf16.mxu0 %v1804_v42 }
 0x428   : > { %1537 = vmatpush3.bf16.msra.mxu0 %v1805_v44 }
 0x429   : > { %1538 = vmatprep.subr.bf16.mxu0 %v1806_v45 }
 0x42c   : > { %1539 = vmatpush3.bf16.msra.mxu0 %v1807_v47 }
 0x4a2   : > { %v963_v50 = vpop.f32.mrb[36].mxu0 }
 0x4a3   : > { %v1584_v51 = vpop.f32.mrb[37].mxu0  ;;  %v1078_v63 = vpack.c.bf16 %v963_v50, %v963_v50 }
 0x4a4   : > { %v966_v54 = vpop.f32.mrb[38].mxu0 }
 0x4a5   : > { %v1585_v56 = vpop.f32.mrb[39].mxu0 }
 0x4e2   : > { %v1072_v57 = vpop.f32.mrb[40].mxu0 }
 0x4e3   : > { %v1079_v59 = vpack.c.bf16 %v1072_v57, %v1072_v57  ;;  %v1624_v62 = vpop.f32.mrb[41].mxu0 }
 0x4e4   : > { %v1075_v3 = vpop.f32.mrb[42].mxu0 }
 0x4e5   : > { %v1625_v14 = vpop.f32.mrb[43].mxu0  ;;  %1240 = vmatprep.mubr.bf16.mxu0 %v1079_v59 }
 0x4e6   : > { %1241 = vmatmul.mubr.bf16.vlgmr.msra.gmra.mrb[44].mxu0 %v1078_v63 }
 0x4e7   : > { %1941 = shalt.err (!%p1938_p13)
}
 0x4e8   : > { %s1942_s11 = scalar_lea.hbm %s2461_s25, 128  ;;  %s1946_s8 = scalar_lea.hbm %s2537_s5, 256 }
 0x4e9   : > { %p1943_p0 = scmp.ne.s32.totalorder %s2461_s25, %s1942_s11  ;;  %p1947_p9 = scmp.lt.u32.totalorder %s2461_s25, %s2537_s5 }
 0x4ea   : > { %p1948_p10 = scmp.lt.u32.totalorder %s1946_s8, %s1942_s11  ;;  %p1950_p1 = scmp.lt.u32.totalorder %s1942_s11, %s2461_s25 }
 0x4eb   : > { %p1944_p5 = pnand %p1943_p0, %p2555_p2 }
 0x4ec   : > { %p1949_p12 = por %p1948_p10, %p1947_p9 }
 0x4ed   : > { %p1945_p6 = pneg %p1944_p5 }
 0x4ee   : > { %p1951_p3 = por %p1950_p1, %p1949_p12 }
 0x4f0   : > { %p1952_p4 = pnand %p1951_p3, %p1945_p6 }
 0x4f2   : > { %1955 = shalt.err (!%p1952_p4)
}
 0x4f3   : > { %1643 = dma.vmem_to_hbm [thread:$0]  (%p2555_p2), %s1283_s7, 128, %s2461_s25, %s1256_s9  }
 0x4f4   : > { %s265_s23 = scalar_lea.vmem [#allocation10], %s1415_s15  ;;  %s2489_s13 = scalar_lea.hbm %s2536_s4, %s1484_s14 }
 0x4f5   : > { %s1269_s10 = sshll.u32 %s265_s23, 4  ;;  %s1251_s25 = scalar_lea.sflag [#allocation4], %s2447_s16  ;;  %s2491_s10 = int_to_ptr.vmem [resolvable:$true] %s1269_s10 }
 0x4f6   : > { %s1956_s15 = scalar_lea.vmem %s2491_s10, 128  ;;  %s2050_s7 = smov [#allocation10]  }
 0x4f7   : > { %p1957_p7 = scmp.ne.s32.totalorder %s2491_s10, %s1956_s15  ;;  %s1960_s22 = sshll.u32 %s2050_s7, 4  ;;  %s1961_s22 = int_to_ptr.vmem [resolvable:$false] %s1960_s22 }
 0x4f8   : > { %s1962_s9 = scalar_lea.vmem %s1961_s22, 256  ;;  %p1963_p13 = scmp.lt.s32.totalorder %s2491_s10, %s1961_s22 }
 0x4f9   : > { %p1958_p8 = pnand %p1957_p7, %p2555_p2  ;;  %p1964_p0 = scmp.lt.s32.totalorder %s1962_s9, %s1956_s15 }
 0x4fb   : > { %p1959_p11 = pneg %p1958_p8  ;;  %p1965_p5 = por %p1964_p0, %p1963_p13 }
 0x4fd   : > { %p1966_p6 = pnand %p1965_p5, %p1959_p11 }
 0x5b9   : > { %v1540_v17 = vpop.f32.mrb[44].mxu0 }
 0x5ba   : > { %v1541_v0 = vpop.f32.mrb[45].mxu0 }
 0x5bb   : > { %v1542_v5 = vadd.f32 %v1541_v0, %v1540_v17  ;;  %v1543_v6 = vpop.f32.mrb[46].mxu0 }
 0x5bc   : > { %v1544_v8 = vpop.f32.mrb[47].mxu0 }
 0x5bd   : > { %1248 = vst [vmem:[%s265_s23] sm:$0xff] %v1542_v5 }
 0x5be   : > { %1969 = shalt.err (!%p1966_p6)
}
 0x5bf   : > { %s1970_s16 = scalar_lea.hbm %s2489_s13, 128  ;;  %s1974_s1 = scalar_lea.hbm %s2536_s4, 256 }
 0x5c0   : > { %p1971_p9 = scmp.ne.s32.totalorder %s2489_s13, %s1970_s16  ;;  %p1975_p1 = scmp.lt.u32.totalorder %s2489_s13, %s2536_s4 }
 0x5c1   : > { %p1976_p3 = scmp.lt.u32.totalorder %s1974_s1, %s1970_s16  ;;  %p1978_p7 = scmp.lt.u32.totalorder %s1970_s16, %s2489_s13 }
 0x5c2   : > { %p1972_p10 = pnand %p1971_p9, %p2555_p2 }
 0x5c3   : > { %p1977_p4 = por %p1976_p3, %p1975_p1 }
 0x5c4   : > { %p1973_p12 = pneg %p1972_p10 }
 0x5c5   : > { %p1979_p8 = por %p1978_p7, %p1977_p4 }
 0x5c7   : > { %p1980_p11 = pnand %p1979_p8, %p1973_p12 }
 0x5c9   : > { %1983 = shalt.err (!%p1980_p11)
}
 0x5ca   : > { %1642 = dma.vmem_to_hbm [thread:$0]  (%p2555_p2), %s2491_s10, 128, %s2489_s13, %s1251_s25  }
 0x5cb PF: > { %p1674_p13 = scmp.ge.s32.totalorder %s2034_s21, 2  ;;  %s1294_s12 = sand.u32 1, %s2022_s18  }
 0x5cc   : > { %p2556_p0 = scmp.ne.s32.totalorder %s2543_s29, 0  ;;  %s1295_s17 = scalar_lea.sflag [#allocation4], %s1294_s12 }
 0x5ce   : > { %p1660_p5 = pnand %p1674_p13, %p2556_p0 }
 0x5d0   : > { %2013 = dma.done.wait (!%p1660_p5), %s1295_s17, 128  }
 0x5d1   : > { %2015 = vsyncadd (!%p1660_p5), %s1295_s17, 4294967168  ;;  %s1304_s23 = scalar_lea.sflag [#allocation12], %s1294_s12 }
 0x5d2   : > { %2017 = dma.done.wait (!%p1660_p5), %s1304_s23, 128  }
 0x5d3   : > { %2019 = vsyncadd (!%p1660_p5), %s1304_s23, 4294967168  ;;  %p22_p2 = scmp.ge.s32.totalorder %s2106_s24, 4   ;;  %s2557_s18 = smov %s2026_s19 }
 0x5d4   : > { %s2558_s19 = smov %s2030_s20  ;;  %s2559_s20 = smov %s2117_s27 }
 0x5d5   : > { %s2560_s21 = smov %s2106_s24  ;;  %24 = sbr.rel (!%p22_p2) target bundleno = 10 (0xa), region = 103 }
 0x5dc   :  { %1309 = vsyncpa [#allocation3], 1 }
 0x5dd   :  { %1311 = vsyncpa [#allocation3 + $0x1], 1 }
 0x5de   :  { %1312 = vsyncpa [#allocation6], 1 }
 0x5df   :  { %1313 = vsyncpa [#allocation9], 1 }
 0x5e0   :  { %1314 = vsyncpa [#allocation4], 1 }
 0x5e1   :  { %1316 = vsyncpa [#allocation4 + $0x1], 1 }
 0x5e2   :  { %1317 = vsyncpa [#allocation12], 1 }
 0x5e3   :  { %1319 = vsyncpa [#allocation12 + $0x1], 1 }

</bundles_post_ra>
